<compile_context>
chip_gen: v7x
topology: tpu7x:2x2x1
jax: 0.10.0
libtpu: 0.0.40
codegen_flags: <defaults>
</compile_context>

<pallas_src>
import functools
import math

import jax
import jax.numpy as jnp
from jax.experimental import pallas as pl
from jax.experimental.pallas import tpu as pltpu


# -----------------------------------------------------------------------------
# Kernel (grid = (T,), weights resident, h/c carried in revisited outputs)
# -----------------------------------------------------------------------------
def _make_kernel(n_acts, sample):
    def kernel(x_ref, aux_ref,
               enc_w_ref, enc_b_ref,
               w_gates_ref, b_gates_ref,
               decval_w_ref, decval_b_ref,
               h0_ref, c0_ref,
               out_ref, h_out_ref, c_out_ref):
        t = pl.program_id(0)
        Bp = h0_ref.shape[0]
        H = h0_ref.shape[1]
        AV = decval_w_ref.shape[1]
        SLAB = out_ref.shape[2]
        NEG = jnp.float32(-1e30)          # finite "-inf" (avoids 0*inf NaNs)

        # ---- recurrent state lives in the (revisited) h/c output blocks ------
        @pl.when(t == 0)
        def _():
            h_out_ref[...] = h0_ref[...]
            c_out_ref[...] = c0_ref[...]

        h_prev = h_out_ref[...]
        c_prev = c_out_ref[...]

        # ---- encoder + relu (bf16 MXU, f32 accumulate, f32 elementwise) ------
        enc = jnp.dot(x_ref[0], enc_w_ref[...],
                      preferred_element_type=jnp.float32) + enc_b_ref[...]
        enc = jnp.maximum(enc, 0.0)

        # ---- single fused gate matmul: [enc, h_prev] @ [W_ih; W_hh], K = 2H --
        lhs = jnp.concatenate(
            [enc.astype(jnp.bfloat16), h_prev.astype(jnp.bfloat16)], axis=1)
        gates = (jnp.dot(lhs, w_gates_ref[...],
                         preferred_element_type=jnp.float32)
                 + b_gates_ref[...])
        # PyTorch gate order: i, f, g, o
        i_g = jax.nn.sigmoid(gates[:, 0 * H:1 * H])
        f_g = jax.nn.sigmoid(gates[:, 1 * H:2 * H])
        g_g = jnp.tanh(gates[:, 2 * H:3 * H])
        o_g = jax.nn.sigmoid(gates[:, 3 * H:4 * H])
        c_new = f_g * c_prev + i_g * g_g
        h_new = o_g * jnp.tanh(c_new)
        h_out_ref[...] = h_new
        c_out_ref[...] = c_new

        # ---- fused decoder + value head (one bf16 MXU matmul) ----------------
        fused = (jnp.dot(h_new.astype(jnp.bfloat16), decval_w_ref[...],
                         preferred_element_type=jnp.float32)
                 + decval_b_ref[...])
        lane = jax.lax.broadcasted_iota(jnp.int32, (Bp, AV), 1)
        # TODO(synk): a static lane slice fused[:, n_acts:n_acts+1] would avoid
        # this one extra XLU reduce; the masked-sum form is kept for robust
        # lowering (value column sits at a non-tile-aligned lane offset).
        value = jnp.sum(jnp.where(lane == n_acts, fused, 0.0),
                        axis=-1, keepdims=True)
        logits = jnp.where(lane < n_acts, fused, NEG)

        # ---- log-softmax over the lane-dense padded logit slab ---------------
        m = jnp.max(logits, axis=-1, keepdims=True)
        z = logits - m
        ez = jnp.exp(z)                              # padded cols -> exactly 0
        sez = jnp.sum(ez, axis=-1, keepdims=True)
        p = ez * (1.0 / sez)
        logp = z - jnp.log(sez)

        # ---- action: Gumbel-max sample or provided act (static choice) -------
        # TODO(synk): torch.multinomial's exact RNG stream is not reproducible;
        # Gumbel-max over the logits is a distributionally-equivalent sample.
        if sample:
            act = jnp.argmax(logits + aux_ref[0],
                             axis=-1).astype(jnp.int32)[:, None]
        else:
            act = aux_ref[0]                          # (Bp, 1) int32

        logprob = jnp.sum(jnp.where(lane == act, logp, 0.0),
                          axis=-1, keepdims=True)
        entropy = -jnp.sum(p * logp, axis=-1, keepdims=True)

        out_lane = jax.lax.broadcasted_iota(jnp.int32, (Bp, SLAB), 1)
        out_ref[0] = (jnp.where(out_lane == 0, logprob, 0.0)
                      + jnp.where(out_lane == 1, entropy, 0.0)
                      + jnp.where(out_lane == 2, value, 0.0)
                      + jnp.where(out_lane == 3, act.astype(jnp.float32), 0.0))

    return kernel


# -----------------------------------------------------------------------------
# Jitted pad + pallas_call path
# -----------------------------------------------------------------------------
@functools.partial(jax.jit, static_argnames=("n_acts", "sample"))
def _lstm_policy_impl(xs_flat, aux, h0, c0,
                      enc_w, enc_b, w_gates, b_gates, decval_w, decval_b,
                      *, n_acts, sample):
    T, B, D = xs_flat.shape
    H = h0.shape[1]
    AV = decval_w.shape[1]
    SLAB = 128
    # Pad batch to a sublane multiple; for real vectorized-env rollouts batch
    # as many envs per call as possible (>=128 rows) to fill the MXU.
    Bp = ((B + 7) // 8) * 8

    xs_p = jnp.zeros((T, Bp, D), jnp.bfloat16).at[:, :B].set(
        xs_flat.astype(jnp.bfloat16))
    if sample:
        aux_p = jnp.zeros((T, Bp, AV), jnp.float32).at[:, :B].set(aux)
    else:
        aux_p = jnp.zeros((T, Bp, 1), jnp.int32).at[:, :B, 0].set(aux)
    h0_p = jnp.zeros((Bp, H), jnp.float32).at[:B].set(h0)
    c0_p = jnp.zeros((Bp, H), jnp.float32).at[:B].set(c0)

    kernel = _make_kernel(n_acts=n_acts, sample=sample)

    def _tmap3(t):      # time-blocked 3-D arrays
        return (t, 0, 0)

    def _cmap2(t):      # resident 2-D arrays (weights, state)
        return (0, 0)

    in_specs = [
        pl.BlockSpec((1, Bp, D), _tmap3),                       # x[t]
        pl.BlockSpec((1,) + tuple(aux_p.shape[1:]), _tmap3),    # gumbel[t] / act[t]
        pl.BlockSpec(tuple(enc_w.shape), _cmap2),               # resident weights
        pl.BlockSpec(tuple(enc_b.shape), _cmap2),
        pl.BlockSpec(tuple(w_gates.shape), _cmap2),
        pl.BlockSpec(tuple(b_gates.shape), _cmap2),
        pl.BlockSpec(tuple(decval_w.shape), _cmap2),
        pl.BlockSpec(tuple(decval_b.shape), _cmap2),
        pl.BlockSpec((Bp, H), _cmap2),                          # h0
        pl.BlockSpec((Bp, H), _cmap2),                          # c0
    ]
    out_specs = (
        pl.BlockSpec((1, Bp, SLAB), _tmap3),                    # scalar slab[t]
        pl.BlockSpec((Bp, H), _cmap2),                          # h (carried)
        pl.BlockSpec((Bp, H), _cmap2),                          # c (carried)
    )
    out_shape = (
        jax.ShapeDtypeStruct((T, Bp, SLAB), jnp.float32),
        jax.ShapeDtypeStruct((Bp, H), jnp.float32),
        jax.ShapeDtypeStruct((Bp, H), jnp.float32),
    )

    slab, h_o, c_o = pl.pallas_call(
        kernel,
        out_shape=out_shape,
        grid=(T,),
        in_specs=in_specs,
        out_specs=out_specs,
        # Time axis is a true recurrence (h/c carried) -> "arbitrary".
        compiler_params=pltpu.CompilerParams(
            dimension_semantics=("arbitrary",)),
    )(xs_p, aux_p, enc_w, enc_b, w_gates, b_gates, decval_w, decval_b,
      h0_p, c0_p)

    logprob = slab[:, :B, 0]
    entropy = slab[:, :B, 1]
    value = slab[:, :B, 2]
    act = slab[:, :B, 3].astype(jnp.int32)
    return act, logprob, entropy, value, h_o[:B], c_o[:B]


# -----------------------------------------------------------------------------
# Public wrappers
# -----------------------------------------------------------------------------
def lstm_policy_rollout(params, xs, state=None, acts=None, key=None):
    """T-step version: xs (T, B, *obs); acts (T, B) int or None (sample)."""
    T, B = xs.shape[0], xs.shape[1]
    H = params["n_hidden"]
    A = params["n_acts"]
    AV = params["decval_w"].shape[1]

    xs_flat = jnp.reshape(xs, (T, B, -1)).astype(jnp.float32)

    if state is None:
        h0 = jnp.zeros((B, H), jnp.float32)
        c0 = jnp.zeros((B, H), jnp.float32)
    else:
        h0 = jnp.asarray(state[0], jnp.float32).reshape(B, H)
        c0 = jnp.asarray(state[1], jnp.float32).reshape(B, H)

    sample = acts is None
    if sample:
        # Fresh Gumbel noise per (step, row) drawn once per call; vary `key`
        # across calls to decorrelate rollouts.
        if key is None:
            key = jax.random.PRNGKey(0)
        aux = jax.random.gumbel(key, (T, B, AV), jnp.float32)
    else:
        aux = jnp.asarray(acts, jnp.int32).reshape(T, B)

    act_o, logprob, entropy, value, h_o, c_o = _lstm_policy_impl(
        xs_flat, aux, h0, c0,
        params["enc_w"], params["enc_b"],
        params["w_gates"], params["b_gates"],
        params["decval_w"], params["decval_b"],
        n_acts=A, sample=sample)

    if not sample:
        act_o = jnp.asarray(acts, jnp.int32).reshape(T, B)
    new_state = (h_o.reshape(1, B, H), c_o.reshape(1, B, H))
    return act_o, logprob, entropy, value, new_state


def lstm_policy_forward(params, x, state=None, act=None, with_entropy=None,
                        key=None):
    """Mirrors LSTMPolicy.forward(x, state, act, with_entropy) (one step)."""
    with_entropy = (act is not None) if with_entropy is None else with_entropy
    B = x.shape[0]
    xs = jnp.reshape(x, (1, B, -1))
    acts = None if act is None else jnp.asarray(act, jnp.int32).reshape(1, B)
    act_o, logprob, entropy, value, new_state = lstm_policy_rollout(
        params, xs, state=state, acts=acts, key=key)
    return (act_o[0], logprob[0],
            entropy[0] if with_entropy else None,
            value[0], new_state)


# -----------------------------------------------------------------------------
# Deterministic parameter init (matches LSTMPolicy.__init__ shapes/semantics)
# -----------------------------------------------------------------------------
def init_params(key, obs_dim, n_hidden, n_acts):
    ks = jax.random.split(key, 8)

    def linear(kw, kb, fan_in, fan_out):
        bound = 1.0 / math.sqrt(fan_in)
        w = jax.random.uniform(kw, (fan_in, fan_out), jnp.float32, -bound, bound)
        b = jax.random.uniform(kb, (1, fan_out), jnp.float32, -bound, bound)
        return w, b

    def orthogonal(k, rows, cols):
        a = jax.random.normal(k, (rows, cols), jnp.float32)
        q, r = jnp.linalg.qr(a)
        q = q * jnp.sign(jnp.diagonal(r))[None, :]
        return q

    enc_w, enc_b = linear(ks[0], ks[1], obs_dim, n_hidden)
    dec_w, dec_b = linear(ks[2], ks[3], n_hidden, n_acts)
    val_w, val_b = linear(ks[4], ks[5], n_hidden, 1)

    H = n_hidden
    w_ih = orthogonal(ks[6], 4 * H, H).T       # stored (H, 4H): x @ W_ih^T
    w_hh = orthogonal(ks[7], 4 * H, H).T       # stored (H, 4H)
    b_gates = jnp.zeros((1, 4 * H), jnp.float32)   # b_ih + b_hh, both zero

    return dict(enc_w=enc_w, enc_b=enc_b, dec_w=dec_w, dec_b=dec_b,
                val_w=val_w, val_b=val_b, w_ih=w_ih, w_hh=w_hh,
                b_gates=b_gates)


def pack_params(raw):
    """bf16 weights; fused [W_ih; W_hh]; value head fused into decoder."""
    H = raw["enc_w"].shape[1]
    A = raw["dec_w"].shape[1]
    AV = 128 * ((A + 1 + 127) // 128)          # lane-padded decoder+value width

    decval_w = jnp.zeros((H, AV), jnp.float32)
    decval_w = decval_w.at[:, :A].set(raw["dec_w"]).at[:, A].set(raw["val_w"][:, 0])
    decval_b = jnp.zeros((1, AV), jnp.float32)
    decval_b = decval_b.at[:, :A].set(raw["dec_b"]).at[:, A].set(raw["val_b"][:, 0])

    w_gates = jnp.concatenate([raw["w_ih"], raw["w_hh"]], axis=0)   # (2H, 4H)

    return dict(
        enc_w=raw["enc_w"].astype(jnp.bfloat16),
        enc_b=raw["enc_b"].astype(jnp.float32),
        w_gates=w_gates.astype(jnp.bfloat16),
        b_gates=raw["b_gates"].astype(jnp.float32),
        decval_w=decval_w.astype(jnp.bfloat16),
        decval_b=decval_b,
        n_acts=A, n_hidden=H,
    )


# -----------------------------------------------------------------------------
if __name__ == "__main__":
    B, C, Hs, Ws = 2, 4, 16, 16          # obs_shape = (4, 16, 16)
    n_hidden, n_acts = 128, 8            # module default n_hidden=128
    obs_dim = C * Hs * Ws

    key = jax.random.PRNGKey(0)
    k_params, k_x, k_roll, k_s1, k_s2 = jax.random.split(key, 5)
    raw = init_params(k_params, obs_dim, n_hidden, n_acts)
    params = pack_params(raw)

    x = jax.random.normal(k_x, (B, C, Hs, Ws), jnp.float32)

    # Single step, sampling path (act=None): Gumbel-max categorical in-kernel.
    act, logprob, entropy, value, state = lstm_policy_forward(
        params, x, state=None, act=None, key=k_s1)
    jax.block_until_ready((act, logprob, value, state))

    # Single step, act-given path (training-style gather/entropy branch).
    act2, logprob2, entropy2, value2, state2 = lstm_policy_forward(
        params, x, state=state, act=jnp.array([1, 3], jnp.int32))
    jax.block_until_ready((act2, logprob2, entropy2, value2, state2))

    # T-step rollout grid: one pallas_call, weights resident across T steps.
    T = 8
    xs = jax.random.normal(k_roll, (T, B, C, Hs, Ws), jnp.float32)
    acts_r, logp_r, ent_r, val_r, state_r = lstm_policy_rollout(
        params, xs, state=None, acts=None, key=k_s2)
    jax.block_until_ready((acts_r, logp_r, ent_r, val_r, state_r))

    # T-step act-given evaluation (PPO-style logprob/entropy/value recompute).
    acts_e, logp_e, ent_e, val_e, state_e = lstm_policy_rollout(
        params, xs, state=None, acts=acts_r)
    jax.block_until_ready((acts_e, logp_e, ent_e, val_e, state_e))

    print("KERNEL_OK")
</pallas_src>

<mosaic_0001>
module attributes {stable_mosaic.version = 11 : i64} {
  func.func @kernel(%arg0: i32, %arg1: memref<1x8x1024xbf16, #tpu.memory_space<vmem>>, %arg2: memref<1x8x128xf32, #tpu.memory_space<vmem>>, %arg3: memref<1024x128xbf16, #tpu.memory_space<vmem>>, %arg4: memref<1x128xf32, #tpu.memory_space<vmem>>, %arg5: memref<256x512xbf16, #tpu.memory_space<vmem>>, %arg6: memref<1x512xf32, #tpu.memory_space<vmem>>, %arg7: memref<128x128xbf16, #tpu.memory_space<vmem>>, %arg8: memref<1x128xf32, #tpu.memory_space<vmem>>, %arg9: memref<8x128xf32, #tpu.memory_space<vmem>>, %arg10: memref<8x128xf32, #tpu.memory_space<vmem>>, %arg11: memref<1x8x128xf32, #tpu.memory_space<vmem>>, %arg12: memref<8x128xf32, #tpu.memory_space<vmem>>, %arg13: memref<8x128xf32, #tpu.memory_space<vmem>>) attributes {dimension_semantics = [#tpu.dimension_semantics<arbitrary>], iteration_bounds = array<i64: 1>, scalar_prefetch = 0 : i64, scratch_operands = 0 : i64, tpu.core_type = #tpu.core_type<tc>, window_params = [{transform_indices = @transform_0, window_bounds = array<i64: 1, 8, 1024>}, {transform_indices = @transform_1, window_bounds = array<i64: 1, 8, 128>}, {pipeline_mode = #tpu.pipeline_mode<synchronous>, transform_indices = @transform_2, window_bounds = array<i64: 1024, 128>}, {pipeline_mode = #tpu.pipeline_mode<synchronous>, transform_indices = @transform_3, window_bounds = array<i64: 1, 128>}, {pipeline_mode = #tpu.pipeline_mode<synchronous>, transform_indices = @transform_4, window_bounds = array<i64: 256, 512>}, {pipeline_mode = #tpu.pipeline_mode<synchronous>, transform_indices = @transform_5, window_bounds = array<i64: 1, 512>}, {pipeline_mode = #tpu.pipeline_mode<synchronous>, transform_indices = @transform_6, window_bounds = array<i64: 128, 128>}, {pipeline_mode = #tpu.pipeline_mode<synchronous>, transform_indices = @transform_7, window_bounds = array<i64: 1, 128>}, {pipeline_mode = #tpu.pipeline_mode<synchronous>, transform_indices = @transform_8, window_bounds = array<i64: 8, 128>}, {pipeline_mode = #tpu.pipeline_mode<synchronous>, transform_indices = @transform_9, window_bounds = array<i64: 8, 128>}, {transform_indices = @transform_10, window_bounds = array<i64: 1, 8, 128>}, {pipeline_mode = #tpu.pipeline_mode<synchronous>, transform_indices = @transform_11, window_bounds = array<i64: 8, 128>}, {pipeline_mode = #tpu.pipeline_mode<synchronous>, transform_indices = @transform_12, window_bounds = array<i64: 8, 128>}]} {
    %c0_i32 = arith.constant 0 : i32
    %0 = arith.cmpi eq, %arg0, %c0_i32 : i32
    %1 = arith.extui %0 : i1 to i32
    %c0_i32_0 = arith.constant 0 : i32
    %2 = arith.cmpi ne, %1, %c0_i32_0 : i32
    scf.if %2 {
      %c0_51 = arith.constant 0 : index
      %c0_52 = arith.constant 0 : index
      %128 = vector.load %arg9[%c0_51, %c0_52] : memref<8x128xf32, #tpu.memory_space<vmem>>, vector<8x128xf32>
      %c0_53 = arith.constant 0 : index
      %c0_54 = arith.constant 0 : index
      %129 = vector.load %arg12[%c0_53, %c0_54] : memref<8x128xf32, #tpu.memory_space<vmem>>, vector<8x128xf32>
      tpu.vector_store %arg12[%c0_53, %c0_54], %128 {strides = array<i32>} : memref<8x128xf32, #tpu.memory_space<vmem>>, vector<8x128xf32>,
      %c0_55 = arith.constant 0 : index
      %c0_56 = arith.constant 0 : index
      %130 = vector.load %arg10[%c0_55, %c0_56] : memref<8x128xf32, #tpu.memory_space<vmem>>, vector<8x128xf32>
      %c0_57 = arith.constant 0 : index
      %c0_58 = arith.constant 0 : index
      %131 = vector.load %arg13[%c0_57, %c0_58] : memref<8x128xf32, #tpu.memory_space<vmem>>, vector<8x128xf32>
      tpu.vector_store %arg13[%c0_57, %c0_58], %130 {strides = array<i32>} : memref<8x128xf32, #tpu.memory_space<vmem>>, vector<8x128xf32>,
    } else {
    }
    %c0 = arith.constant 0 : index
    %c0_1 = arith.constant 0 : index
    %3 = vector.load %arg12[%c0, %c0_1] : memref<8x128xf32, #tpu.memory_space<vmem>>, vector<8x128xf32>
    %c0_2 = arith.constant 0 : index
    %c0_3 = arith.constant 0 : index
    %4 = vector.load %arg13[%c0_2, %c0_3] : memref<8x128xf32, #tpu.memory_space<vmem>>, vector<8x128xf32>
    %c0_4 = arith.constant 0 : index
    %c0_5 = arith.constant 0 : index
    %c0_6 = arith.constant 0 : index
    %5 = vector.load %arg1[%c0_4, %c0_5, %c0_6] : memref<1x8x1024xbf16, #tpu.memory_space<vmem>>, vector<1x8x1024xbf16>
    %6 = vector.shape_cast %5 : vector<1x8x1024xbf16> to vector<8x1024xbf16>
    %c0_7 = arith.constant 0 : index
    %c0_8 = arith.constant 0 : index
    %7 = vector.load %arg3[%c0_7, %c0_8] : memref<1024x128xbf16, #tpu.memory_space<vmem>>, vector<1024x128xbf16>
    %cst = arith.constant dense<0.000000e+00> : vector<8x128xf32>
    %8 = tpu.matmul %6, %7, %cst {dimension_numbers = #tpu.dot_dimension_numbers<[1], [0], [0], [1], [0, 0, 1, 1], [], []>} : vector<8x1024xbf16>, vector<1024x128xbf16>, vector<8x128xf32> -> vector<8x128xf32>
    %c0_9 = arith.constant 0 : index
    %c0_10 = arith.constant 0 : index
    %9 = vector.load %arg4[%c0_9, %c0_10] : memref<1x128xf32, #tpu.memory_space<vmem>>, vector<1x128xf32>
    %10 = vector.broadcast %9 : vector<1x128xf32> to vector<8x128xf32>
    %11 = arith.addf %8, %10 : vector<8x128xf32>
    %cst_11 = arith.constant 0.000000e+00 : f32
    %12 = vector.broadcast %cst_11 : f32 to vector<8x128xf32>
    %13 = arith.maximumf %11, %12 : vector<8x128xf32>
    %14 = arith.truncf %13 : vector<8x128xf32> to vector<8x128xbf16>
    %15 = arith.truncf %3 : vector<8x128xf32> to vector<8x128xbf16>
    %16 = tpu.concatenate %14, %15 in 1 : vector<8x128xbf16>, vector<8x128xbf16> -> vector<8x256xbf16>
    %c0_12 = arith.constant 0 : index
    %c0_13 = arith.constant 0 : index
    %17 = vector.load %arg5[%c0_12, %c0_13] : memref<256x512xbf16, #tpu.memory_space<vmem>>, vector<256x512xbf16>
    %cst_14 = arith.constant dense<0.000000e+00> : vector<8x512xf32>
    %18 = tpu.matmul %16, %17, %cst_14 {dimension_numbers = #tpu.dot_dimension_numbers<[1], [0], [0], [1], [0, 0, 1, 1], [], []>} : vector<8x256xbf16>, vector<256x512xbf16>, vector<8x512xf32> -> vector<8x512xf32>
    %c0_15 = arith.constant 0 : index
    %c0_16 = arith.constant 0 : index
    %19 = vector.load %arg6[%c0_15, %c0_16] : memref<1x512xf32, #tpu.memory_space<vmem>>, vector<1x512xf32>
    %20 = vector.broadcast %19 : vector<1x512xf32> to vector<8x512xf32>
    %21 = arith.addf %18, %20 : vector<8x512xf32>
    %22 = vector.extract_strided_slice %21 {offsets = [0, 0], sizes = [8, 128], strides = [1, 1]} : vector<8x512xf32> to vector<8x128xf32>
    %23 = arith.negf %22 : vector<8x128xf32>
    %24 = math.exp %23 : vector<8x128xf32>
    %cst_17 = arith.constant 1.000000e+00 : f32
    %25 = vector.broadcast %cst_17 : f32 to vector<8x128xf32>
    %26 = arith.addf %25, %24 : vector<8x128xf32>
    %27 = arith.divf %25, %26 : vector<8x128xf32>
    %28 = vector.extract_strided_slice %21 {offsets = [0, 128], sizes = [8, 128], strides = [1, 1]} : vector<8x512xf32> to vector<8x128xf32>
    %29 = arith.negf %28 : vector<8x128xf32>
    %30 = math.exp %29 : vector<8x128xf32>
    %cst_18 = arith.constant 1.000000e+00 : f32
    %31 = vector.broadcast %cst_18 : f32 to vector<8x128xf32>
    %32 = arith.addf %31, %30 : vector<8x128xf32>
    %33 = arith.divf %31, %32 : vector<8x128xf32>
    %34 = vector.extract_strided_slice %21 {offsets = [0, 256], sizes = [8, 128], strides = [1, 1]} : vector<8x512xf32> to vector<8x128xf32>
    %35 = math.tanh %34 : vector<8x128xf32>
    %36 = vector.extract_strided_slice %21 {offsets = [0, 384], sizes = [8, 128], strides = [1, 1]} : vector<8x512xf32> to vector<8x128xf32>
    %37 = arith.negf %36 : vector<8x128xf32>
    %38 = math.exp %37 : vector<8x128xf32>
    %cst_19 = arith.constant 1.000000e+00 : f32
    %39 = vector.broadcast %cst_19 : f32 to vector<8x128xf32>
    %40 = arith.addf %39, %38 : vector<8x128xf32>
    %41 = arith.divf %39, %40 : vector<8x128xf32>
    %42 = arith.mulf %33, %4 : vector<8x128xf32>
    %43 = arith.mulf %27, %35 : vector<8x128xf32>
    %44 = arith.addf %42, %43 : vector<8x128xf32>
    %45 = math.tanh %44 : vector<8x128xf32>
    %46 = arith.mulf %41, %45 : vector<8x128xf32>
    %c0_20 = arith.constant 0 : index
    %c0_21 = arith.constant 0 : index
    %47 = vector.load %arg12[%c0_20, %c0_21] : memref<8x128xf32, #tpu.memory_space<vmem>>, vector<8x128xf32>
    tpu.vector_store %arg12[%c0_20, %c0_21], %46 {strides = array<i32>} : memref<8x128xf32, #tpu.memory_space<vmem>>, vector<8x128xf32>,
    %c0_22 = arith.constant 0 : index
    %c0_23 = arith.constant 0 : index
    %48 = vector.load %arg13[%c0_22, %c0_23] : memref<8x128xf32, #tpu.memory_space<vmem>>, vector<8x128xf32>
    tpu.vector_store %arg13[%c0_22, %c0_23], %44 {strides = array<i32>} : memref<8x128xf32, #tpu.memory_space<vmem>>, vector<8x128xf32>,
    %49 = arith.truncf %46 : vector<8x128xf32> to vector<8x128xbf16>
    %c0_24 = arith.constant 0 : index
    %c0_25 = arith.constant 0 : index
    %50 = vector.load %arg7[%c0_24, %c0_25] : memref<128x128xbf16, #tpu.memory_space<vmem>>, vector<128x128xbf16>
    %cst_26 = arith.constant dense<0.000000e+00> : vector<8x128xf32>
    %51 = tpu.matmul %49, %50, %cst_26 {dimension_numbers = #tpu.dot_dimension_numbers<[1], [0], [0], [1], [0, 0, 1, 1], [], []>} : vector<8x128xbf16>, vector<128x128xbf16>, vector<8x128xf32> -> vector<8x128xf32>
    %c0_27 = arith.constant 0 : index
    %c0_28 = arith.constant 0 : index
    %52 = vector.load %arg8[%c0_27, %c0_28] : memref<1x128xf32, #tpu.memory_space<vmem>>, vector<1x128xf32>
    %53 = vector.broadcast %52 : vector<1x128xf32> to vector<8x128xf32>
    %54 = arith.addf %51, %53 : vector<8x128xf32>
    %55 = tpu.iota {dimensions = array<i32: 1>} : vector<8x128xi32>
    %c8_i32 = arith.constant 8 : i32
    %56 = vector.broadcast %c8_i32 : i32 to vector<8x128xi32>
    %57 = arith.cmpi eq, %55, %56 : vector<8x128xi32>
    %cst_29 = arith.constant 0.000000e+00 : f32
    %58 = vector.broadcast %cst_29 : f32 to vector<8x128xf32>
    %59 = arith.select %57, %54, %58 : vector<8x128xi1>, vector<8x128xf32>
    %cst_30 = arith.constant dense<0.000000e+00> : vector<8xf32>
    %60 = vector.multi_reduction <add>, %59, %cst_30 [1] : vector<8x128xf32> to vector<8xf32>
    %61 = vector.shape_cast %60 : vector<8xf32> to vector<8x1xf32>
    %c8_i32_31 = arith.constant 8 : i32
    %62 = vector.broadcast %c8_i32_31 : i32 to vector<8x128xi32>
    %63 = arith.cmpi slt, %55, %62 : vector<8x128xi32>
    %cst_32 = arith.constant -1.000000e+30 : f32
    %64 = vector.broadcast %cst_32 : f32 to vector<8x128xf32>
    %65 = arith.select %63, %54, %64 : vector<8x128xi1>, vector<8x128xf32>
    %cst_33 = arith.constant dense<0xFF800000> : vector<8xf32>
    %66 = vector.multi_reduction <maximumf>, %65, %cst_33 [1] : vector<8x128xf32> to vector<8xf32>
    %67 = vector.shape_cast %66 : vector<8xf32> to vector<8x1xf32>
    %68 = vector.broadcast %67 : vector<8x1xf32> to vector<8x128xf32>
    %69 = arith.subf %65, %68 : vector<8x128xf32>
    %70 = math.exp %69 : vector<8x128xf32>
    %cst_34 = arith.constant dense<0.000000e+00> : vector<8xf32>
    %71 = vector.multi_reduction <add>, %70, %cst_34 [1] : vector<8x128xf32> to vector<8xf32>
    %72 = vector.shape_cast %71 : vector<8xf32> to vector<8x1xf32>
    %cst_35 = arith.constant 1.000000e+00 : f32
    %73 = vector.broadcast %cst_35 : f32 to vector<8x1xf32>
    %74 = arith.divf %73, %72 : vector<8x1xf32>
    %75 = vector.broadcast %74 : vector<8x1xf32> to vector<8x128xf32>
    %76 = arith.mulf %70, %75 : vector<8x128xf32>
    %77 = math.log %72 : vector<8x1xf32>
    %78 = vector.broadcast %77 : vector<8x1xf32> to vector<8x128xf32>
    %79 = arith.subf %69, %78 : vector<8x128xf32>
    %c0_36 = arith.constant 0 : index
    %c0_37 = arith.constant 0 : index
    %c0_38 = arith.constant 0 : index
    %80 = vector.load %arg2[%c0_36, %c0_37, %c0_38] : memref<1x8x128xf32, #tpu.memory_space<vmem>>, vector<1x8x128xf32>
    %81 = vector.shape_cast %80 : vector<1x8x128xf32> to vector<8x128xf32>
    %82 = arith.addf %65, %81 : vector<8x128xf32>
    %83 = tpu.reduce_index %82 {axis = 1 : i32, kind = #tpu.reduction_kind<arg_max>} : vector<8x128xf32> -> vector<8xi32>
    %84 = vector.shape_cast %83 : vector<8xi32> to vector<8x1xi32>
    %85 = vector.broadcast %84 : vector<8x1xi32> to vector<8x128xi32>
    %86 = arith.cmpi eq, %55, %85 : vector<8x128xi32>
    %cst_39 = arith.constant 0.000000e+00 : f32
    %87 = vector.broadcast %cst_39 : f32 to vector<8x128xf32>
    %88 = arith.select %86, %79, %87 : vector<8x128xi1>, vector<8x128xf32>
    %cst_40 = arith.constant dense<0.000000e+00> : vector<8xf32>
    %89 = vector.multi_reduction <add>, %88, %cst_40 [1] : vector<8x128xf32> to vector<8xf32>
    %90 = vector.shape_cast %89 : vector<8xf32> to vector<8x1xf32>
    %91 = arith.mulf %76, %79 : vector<8x128xf32>
    %cst_41 = arith.constant dense<0.000000e+00> : vector<8xf32>
    %92 = vector.multi_reduction <add>, %91, %cst_41 [1] : vector<8x128xf32> to vector<8xf32>
    %93 = vector.shape_cast %92 : vector<8xf32> to vector<8x1xf32>
    %cst_42 = arith.constant 0.000000e+00 : f32
    %94 = vector.broadcast %cst_42 : f32 to vector<8x1xf32>
    %95 = arith.subf %94, %93 : vector<8x1xf32>
    %96 = tpu.iota {dimensions = array<i32: 1>} : vector<8x128xi32>
    %c0_i32_43 = arith.constant 0 : i32
    %97 = vector.broadcast %c0_i32_43 : i32 to vector<8x128xi32>
    %98 = arith.cmpi eq, %96, %97 : vector<8x128xi32>
    %cst_44 = arith.constant 0.000000e+00 : f32
    %99 = vector.shape_cast %90 : vector<8x1xf32> to vector<8x1xf32>
    %100 = vector.broadcast %99 : vector<8x1xf32> to vector<8x128xf32>
    %101 = vector.broadcast %cst_44 : f32 to vector<8x128xf32>
    %102 = arith.select %98, %100, %101 : vector<8x128xi1>, vector<8x128xf32>
    %c1_i32 = arith.constant 1 : i32
    %103 = vector.broadcast %c1_i32 : i32 to vector<8x128xi32>
    %104 = arith.cmpi eq, %96, %103 : vector<8x128xi32>
    %cst_45 = arith.constant 0.000000e+00 : f32
    %105 = vector.shape_cast %95 : vector<8x1xf32> to vector<8x1xf32>
    %106 = vector.broadcast %105 : vector<8x1xf32> to vector<8x128xf32>
    %107 = vector.broadcast %cst_45 : f32 to vector<8x128xf32>
    %108 = arith.select %104, %106, %107 : vector<8x128xi1>, vector<8x128xf32>
    %109 = arith.addf %102, %108 : vector<8x128xf32>
    %c2_i32 = arith.constant 2 : i32
    %110 = vector.broadcast %c2_i32 : i32 to vector<8x128xi32>
    %111 = arith.cmpi eq, %96, %110 : vector<8x128xi32>
    %cst_46 = arith.constant 0.000000e+00 : f32
    %112 = vector.shape_cast %61 : vector<8x1xf32> to vector<8x1xf32>
    %113 = vector.broadcast %112 : vector<8x1xf32> to vector<8x128xf32>
    %114 = vector.broadcast %cst_46 : f32 to vector<8x128xf32>
    %115 = arith.select %111, %113, %114 : vector<8x128xi1>, vector<8x128xf32>
    %116 = arith.addf %109, %115 : vector<8x128xf32>
    %c3_i32 = arith.constant 3 : i32
    %117 = vector.broadcast %c3_i32 : i32 to vector<8x128xi32>
    %118 = arith.cmpi eq, %96, %117 : vector<8x128xi32>
    %119 = arith.sitofp %84 : vector<8x1xi32> to vector<8x1xf32>
    %cst_47 = arith.constant 0.000000e+00 : f32
    %120 = vector.shape_cast %119 : vector<8x1xf32> to vector<8x1xf32>
    %121 = vector.broadcast %120 : vector<8x1xf32> to vector<8x128xf32>
    %122 = vector.broadcast %cst_47 : f32 to vector<8x128xf32>
    %123 = arith.select %118, %121, %122 : vector<8x128xi1>, vector<8x128xf32>
    %124 = arith.addf %116, %123 : vector<8x128xf32>
    %c0_48 = arith.constant 0 : index
    %c0_49 = arith.constant 0 : index
    %c0_50 = arith.constant 0 : index
    %125 = vector.load %arg11[%c0_48, %c0_49, %c0_50] : memref<1x8x128xf32, #tpu.memory_space<vmem>>, vector<1x8x128xf32>
    %126 = vector.shape_cast %125 : vector<1x8x128xf32> to vector<8x128xf32>
    %127 = vector.shape_cast %124 : vector<8x128xf32> to vector<1x8x128xf32>
    tpu.vector_store %arg11[%c0_48, %c0_49, %c0_50], %127 {strides = array<i32>} : memref<1x8x128xf32, #tpu.memory_space<vmem>>, vector<1x8x128xf32>,
    return
  }
  func.func @transform_0(%arg0: i32) -> (i32, i32, i32) {
    %c0_i32 = arith.constant 0 : i32
    %c0_i32_0 = arith.constant 0 : i32
    %c0_i32_1 = arith.constant 0 : i32
    return %arg0, %c0_i32, %c0_i32_0 : i32, i32, i32
  }
  func.func @transform_1(%arg0: i32) -> (i32, i32, i32) {
    %c0_i32 = arith.constant 0 : i32
    %c0_i32_0 = arith.constant 0 : i32
    %c0_i32_1 = arith.constant 0 : i32
    return %arg0, %c0_i32, %c0_i32_0 : i32, i32, i32
  }
  func.func @transform_2(%arg0: i32) -> (i32, i32) {
    %c0_i32 = arith.constant 0 : i32
    %c0_i32_0 = arith.constant 0 : i32
    %c0_i32_1 = arith.constant 0 : i32
    return %c0_i32, %c0_i32_0 : i32, i32
  }
  func.func @transform_3(%arg0: i32) -> (i32, i32) {
    %c0_i32 = arith.constant 0 : i32
    %c0_i32_0 = arith.constant 0 : i32
    %c0_i32_1 = arith.constant 0 : i32
    return %c0_i32, %c0_i32_0 : i32, i32
  }
  func.func @transform_4(%arg0: i32) -> (i32, i32) {
    %c0_i32 = arith.constant 0 : i32
    %c0_i32_0 = arith.constant 0 : i32
    %c0_i32_1 = arith.constant 0 : i32
    return %c0_i32, %c0_i32_0 : i32, i32
  }
  func.func @transform_5(%arg0: i32) -> (i32, i32) {
    %c0_i32 = arith.constant 0 : i32
    %c0_i32_0 = arith.constant 0 : i32
    %c0_i32_1 = arith.constant 0 : i32
    return %c0_i32, %c0_i32_0 : i32, i32
  }
  func.func @transform_6(%arg0: i32) -> (i32, i32) {
    %c0_i32 = arith.constant 0 : i32
    %c0_i32_0 = arith.constant 0 : i32
    %c0_i32_1 = arith.constant 0 : i32
    return %c0_i32, %c0_i32_0 : i32, i32
  }
  func.func @transform_7(%arg0: i32) -> (i32, i32) {
    %c0_i32 = arith.constant 0 : i32
    %c0_i32_0 = arith.constant 0 : i32
    %c0_i32_1 = arith.constant 0 : i32
    return %c0_i32, %c0_i32_0 : i32, i32
  }
  func.func @transform_8(%arg0: i32) -> (i32, i32) {
    %c0_i32 = arith.constant 0 : i32
    %c0_i32_0 = arith.constant 0 : i32
    %c0_i32_1 = arith.constant 0 : i32
    return %c0_i32, %c0_i32_0 : i32, i32
  }
  func.func @transform_9(%arg0: i32) -> (i32, i32) {
    %c0_i32 = arith.constant 0 : i32
    %c0_i32_0 = arith.constant 0 : i32
    %c0_i32_1 = arith.constant 0 : i32
    return %c0_i32, %c0_i32_0 : i32, i32
  }
  func.func @transform_10(%arg0: i32) -> (i32, i32, i32) {
    %c0_i32 = arith.constant 0 : i32
    %c0_i32_0 = arith.constant 0 : i32
    %c0_i32_1 = arith.constant 0 : i32
    return %arg0, %c0_i32, %c0_i32_0 : i32, i32, i32
  }
  func.func @transform_11(%arg0: i32) -> (i32, i32) {
    %c0_i32 = arith.constant 0 : i32
    %c0_i32_0 = arith.constant 0 : i32
    %c0_i32_1 = arith.constant 0 : i32
    return %c0_i32, %c0_i32_0 : i32, i32
  }
  func.func @transform_12(%arg0: i32) -> (i32, i32) {
    %c0_i32 = arith.constant 0 : i32
    %c0_i32_0 = arith.constant 0 : i32
    %c0_i32_1 = arith.constant 0 : i32
    return %c0_i32, %c0_i32_0 : i32, i32
  }
}

</mosaic_0001>

<bundles_post_ra>
// kernel: _lstm_policy_impl.1
= control target key start
LH: loop header
LB: loop body
LE: loop exit
PB: predicated region body
PF: predicated region fallthrough
CT: control target
= control target key end

     0   :  { %18 = vsyncpa [#allocation3], 0  ;;  %s2157_s0 = inlined_call_operand.vmem [shape: bf16[1,8,1024], index: 0, kind: input, shape index: {}]   ;;  %s2158_s1 = inlined_call_operand.vmem [shape: f32[1,8,128], index: 1, kind: input, shape index: {}]   ;;  %s2159_s2 = inlined_call_operand.hbm [shape: bf16[1024,128], index: 2, kind: input, shape index: {}]   ;;  %s2160_s3 = inlined_call_operand.vmem [shape: f32[1,128], index: 3, kind: input, shape index: {}]   ;;  %s2161_s4 = inlined_call_operand.hbm [shape: bf16[256,512], index: 4, kind: input, shape index: {}]   ;;  %s2162_s5 = inlined_call_operand.vmem [shape: f32[1,512], index: 5, kind: input, shape index: {}]   ;;  %s2163_s6 = inlined_call_operand.vmem [shape: bf16[128,128], index: 6, kind: input, shape index: {}]   ;;  %s2164_s7 = inlined_call_operand.vmem [shape: f32[1,128], index: 7, kind: input, shape index: {}]   ;;  %s2165_s8 = inlined_call_operand.vmem [shape: f32[8,128], index: 8, kind: input, shape index: {}]   ;;  %s2166_s9 = inlined_call_operand.vmem [shape: f32[8,128], index: 9, kind: input, shape index: {}]   ;;  %s2167_s10 = inlined_call_operand.vmem [shape: f32[1,8,128], index: 10, kind: output, shape index: {0}]   ;;  %s2168_s11 = inlined_call_operand.vmem [shape: f32[8,128], index: 11, kind: output, shape index: {1}]   ;;  %s2169_s12 = inlined_call_operand.vmem [shape: f32[8,128], index: 12, kind: output, shape index: {2}]  }
   0x1   :  { %19 = vsyncpa [#allocation5], 0  ;;  %s1997_s21 = smov [#allocation2]   ;;  %s1949_s25 = scalar_lea.hbm %s2159_s2, 8192 }
   0x2   :  { %s29_s22 = sshll.u32 %s1997_s21, 4  ;;  %p1950_p0 = scmp.ne.s32.totalorder %s2159_s2, %s1949_s25  ;;  %s30_s22 = int_to_ptr.vmem [resolvable:$true] %s29_s22 }
   0x3   :  { %p1953_p1 = scmp.lt.u32.totalorder %s1949_s25, %s2159_s2 }
   0x5   :  { %p1955_p2 = pnand %p1953_p1, %p1950_p0 }
   0x7   :  { %1958 = shalt.err (!%p1955_p2)
}
   0x8   :  { %s1959_s30 = scalar_lea.vmem %s30_s22, 8192  ;;  %p1964_p4 = scmp.lt.s32.totalorder %s30_s22, %s30_s22 }
   0x9   :  { %p1960_p3 = scmp.ne.s32.totalorder %s30_s22, %s1959_s30  ;;  %p1965_p5 = scmp.lt.s32.totalorder %s1959_s30, %s1959_s30 }
   0xb   :  { %p1966_p6 = por %p1965_p5, %p1964_p4 }
   0xd   :  { %p1967_p7 = pnand %p1966_p6, %p1960_p3 }
   0xf   :  { %1970 = shalt.err (!%p1967_p7)
}
  0x10   :  { %s1998_s13 = smov 64   ;;  %s1999_s14 = smov 4  }
  0x11   :  { %35 = dma.hbm_to_vmem [thread:$0]  %s2159_s2, 8192, %s30_s22, [#allocation3], %s1998_s13, %s1998_s13, %s1999_s14  }
  0x12   :  { %s2000_s17 = smov [#allocation4]   ;;  %s1971_s21 = scalar_lea.hbm %s2161_s4, 8192 }
  0x13   :  { %s43_s18 = sshll.u32 %s2000_s17, 4  ;;  %p1972_p8 = scmp.ne.s32.totalorder %s2161_s4, %s1971_s21  ;;  %s44_s18 = int_to_ptr.vmem [resolvable:$true] %s43_s18 }
  0x14   :  { %p1975_p9 = scmp.lt.u32.totalorder %s1971_s21, %s2161_s4 }
  0x16   :  { %p1977_p10 = pnand %p1975_p9, %p1972_p8 }
  0x18   :  { %1980 = shalt.err (!%p1977_p10)
}
  0x19   :  { %s1981_s27 = scalar_lea.vmem %s44_s18, 8192  ;;  %p1986_p12 = scmp.lt.s32.totalorder %s44_s18, %s44_s18 }
  0x1a   :  { %p1982_p11 = scmp.ne.s32.totalorder %s44_s18, %s1981_s27  ;;  %p1987_p13 = scmp.lt.s32.totalorder %s1981_s27, %s1981_s27 }
  0x1c   :  { %p1988_p0 = por %p1987_p13, %p1986_p12 }
  0x1e   :  { %p1989_p1 = pnand %p1988_p0, %p1982_p11 }
  0x20   :  { %1992 = shalt.err (!%p1989_p1)
}
  0x21   :  { %s2001_s2 = smov 256   ;;  %s2002_s22 = smov 16  }
  0x22   :  { %49 = dma.hbm_to_vmem [thread:$0]  %s2161_s4, 8192, %s44_s18, [#allocation5], %s2001_s2, %s2001_s2, %s2002_s22  }
  0x23   :  { %1993 = dma.done.wait [#allocation3], 8192  }
  0x24   :  { %1994 = vsyncadd [#allocation3], 4294959104 }
  0x25   :  { %1995 = dma.done.wait [#allocation5], 8192  }
  0x26   :  { %1996 = vsyncadd [#allocation5], 4294959104  ;;  %v1751_v0 = vld [vmem:[#allocation2 + $0x40] sm:$0xff]   ;;  %v1755_v4 = vld [vmem:[#allocation2 + $0x48] sm:$0xff]   ;;  %vm2004_vm0 = vmmov 0  }
  0x27   :  { %v1752_v1 = vld [vmem:[#allocation2 + $0xc0] sm:$0xff]   ;;  %1626 = vmatprep.subr.bf16.mxu0 %v1751_v0  ;;  %v1756_v5 = vld [vmem:[#allocation2 + $0xc8] sm:$0xff]   ;;  %v1759_v8 = vld [vmem:[#allocation2 + $0x50] sm:$0xff]  }
  0x28   :  { %v1753_v2 = vld [vmem:[#allocation2] sm:$0xff]   ;;  %1648 = vmatprep.subr.bf16.mxu1 %v1752_v1  ;;  %v1757_v6 = vld [vmem:[#allocation2 + $0x8] sm:$0xff]   ;;  %v1760_v9 = vld [vmem:[#allocation2 + $0xd0] sm:$0xff]  }
  0x29   :  { %v1754_v3 = vld [vmem:[#allocation2 + $0x80] sm:$0xff]   ;;  %1627 = vmatpush3.bf16.msra.mxu0 %v1753_v2  ;;  %v1758_v7 = vld [vmem:[#allocation2 + $0x88] sm:$0xff]   ;;  %v1761_v10 = vld [vmem:[#allocation2 + $0x10] sm:$0xff]  }
  0x2a   :  { %1649 = vmatpush3.bf16.msra.mxu1 %v1754_v3  ;;  %1628 = vmatprep.subr.bf16.mxu0 %v1755_v4  ;;  %v1762_v11 = vld [vmem:[#allocation2 + $0x90] sm:$0xff]   ;;  %v1763_v12 = vld [vmem:[#allocation2 + $0x58] sm:$0xff]   ;;  %v1767_v16 = vld [vmem:[#allocation2 + $0x60] sm:$0xff]  }
  0x2b   :  { %1650 = vmatprep.subr.bf16.mxu1 %v1756_v5  ;;  %v1764_v13 = vld [vmem:[#allocation2 + $0xd8] sm:$0xff]   ;;  %v1768_v17 = vld [vmem:[#allocation2 + $0xe0] sm:$0xff]   ;;  %v1771_v20 = vld [vmem:[#allocation2 + $0x68] sm:$0xff]  }
  0x2c   :  { %v1765_v14 = vld [vmem:[#allocation2 + $0x18] sm:$0xff]   ;;  %v1769_v18 = vld [vmem:[#allocation2 + $0x20] sm:$0xff]   ;;  %v1772_v21 = vld [vmem:[#allocation2 + $0xe8] sm:$0xff]  }
  0x2d   :  { %1629 = vmatpush3.bf16.msra.mxu0 %v1757_v6  ;;  %v1766_v15 = vld [vmem:[#allocation2 + $0x98] sm:$0xff]   ;;  %v1770_v19 = vld [vmem:[#allocation2 + $0xa0] sm:$0xff]   ;;  %v1773_v22 = vld [vmem:[#allocation2 + $0x28] sm:$0xff]  }
  0x2e   :  { %1651 = vmatpush3.bf16.msra.mxu1 %v1758_v7  ;;  %1630 = vmatprep.subr.bf16.mxu0 %v1759_v8  ;;  %v1774_v23 = vld [vmem:[#allocation2 + $0xa8] sm:$0xff]   ;;  %v1775_v24 = vld [vmem:[#allocation2 + $0x70] sm:$0xff]   ;;  %v1779_v28 = vld [vmem:[#allocation2 + $0x78] sm:$0xff]  }
  0x2f   :  { %1652 = vmatprep.subr.bf16.mxu1 %v1760_v9  ;;  %v1776_v25 = vld [vmem:[#allocation2 + $0xf0] sm:$0xff]   ;;  %v1780_v29 = vld [vmem:[#allocation2 + $0xf8] sm:$0xff]   ;;  %v77_v32 = vld [vmem:[%s2157_s0] sm:$0xff] }
  0x30   :  { %v1777_v26 = vld [vmem:[#allocation2 + $0x30] sm:$0xff]   ;;  %v1781_v30 = vld [vmem:[#allocation2 + $0x38] sm:$0xff]   ;;  %v78_v33 = vld [vmem:[%s2157_s0 + $0x8] sm:$0xff]  ;;  %v1478_v34 = vcombine.low %v77_v32, %v77_v32  ;;  %v1479_v35 = vcombine.high %v77_v32, %v77_v32 }
  0x31   :  { %1631 = vmatpush3.bf16.msra.mxu0 %v1761_v10  ;;  %v1778_v27 = vld [vmem:[#allocation2 + $0xb0] sm:$0xff]   ;;  %v1782_v31 = vld [vmem:[#allocation2 + $0xb8] sm:$0xff]   ;;  %v1480_v36 = vcombine.low %v78_v33, %v78_v33  ;;  %v1481_v37 = vcombine.high %v78_v33, %v78_v33  ;;  %v1787_v38 = vld [vmem:[#allocation2 + $0x140] sm:$0xff]  }
  0x32   :  { %1653 = vmatpush3.bf16.msra.mxu1 %v1762_v11  ;;  %1632 = vmatprep.subr.bf16.mxu0 %v1763_v12  ;;  %v1788_v39 = vld [vmem:[#allocation2 + $0x1c0] sm:$0xff]   ;;  %v1791_v42 = vld [vmem:[#allocation2 + $0x148] sm:$0xff]   ;;  %v1795_v46 = vld [vmem:[#allocation2 + $0x150] sm:$0xff]  }
  0x33   :  { %1654 = vmatprep.subr.bf16.mxu1 %v1764_v13  ;;  %660 = vmatprep.mubr.bf16.mxu0 %v1479_v35  ;;  %v1789_v40 = vld [vmem:[#allocation2 + $0x100] sm:$0xff]   ;;  %v1792_v43 = vld [vmem:[#allocation2 + $0x1c8] sm:$0xff]   ;;  %v1796_v47 = vld [vmem:[#allocation2 + $0x1d0] sm:$0xff]  }
  0x34   :  { %700 = vmatprep.mubr.bf16.mxu1 %v1481_v37  ;;  %v1790_v41 = vld [vmem:[#allocation2 + $0x180] sm:$0xff]   ;;  %v1793_v44 = vld [vmem:[#allocation2 + $0x108] sm:$0xff]   ;;  %v1797_v48 = vld [vmem:[#allocation2 + $0x110] sm:$0xff]  }
  0x35   :  { %1633 = vmatpush3.bf16.msra.mxu0 %v1765_v14  ;;  %v1794_v45 = vld [vmem:[#allocation2 + $0x188] sm:$0xff]   ;;  %v1798_v49 = vld [vmem:[#allocation2 + $0x190] sm:$0xff]   ;;  %v1799_v50 = vld [vmem:[#allocation2 + $0x158] sm:$0xff]  }
  0x36   :  { %1655 = vmatpush3.bf16.msra.mxu1 %v1766_v15  ;;  %1634 = vmatprep.subr.bf16.mxu0 %v1767_v16  ;;  %v1800_v51 = vld [vmem:[#allocation2 + $0x1d8] sm:$0xff]   ;;  %v1803_v54 = vld [vmem:[#allocation2 + $0x160] sm:$0xff]   ;;  %v1807_v58 = vld [vmem:[#allocation2 + $0x168] sm:$0xff]  }
  0x37   :  { %1656 = vmatprep.subr.bf16.mxu1 %v1768_v17  ;;  %v1801_v52 = vld [vmem:[#allocation2 + $0x118] sm:$0xff]   ;;  %v1804_v55 = vld [vmem:[#allocation2 + $0x1e0] sm:$0xff]   ;;  %v1808_v59 = vld [vmem:[#allocation2 + $0x1e8] sm:$0xff]  }
  0x38   :  { %v1802_v53 = vld [vmem:[#allocation2 + $0x198] sm:$0xff]   ;;  %v1805_v56 = vld [vmem:[#allocation2 + $0x120] sm:$0xff]   ;;  %v1809_v60 = vld [vmem:[#allocation2 + $0x128] sm:$0xff]  }
  0x39   :  { %1635 = vmatpush3.bf16.msra.mxu0 %v1769_v18  ;;  %v1806_v57 = vld [vmem:[#allocation2 + $0x1a0] sm:$0xff]   ;;  %v1810_v61 = vld [vmem:[#allocation2 + $0x1a8] sm:$0xff]   ;;  %v1811_v62 = vld [vmem:[#allocation2 + $0x170] sm:$0xff]  }
  0x3a   :  { %1657 = vmatpush3.bf16.msra.mxu1 %v1770_v19  ;;  %1636 = vmatprep.subr.bf16.mxu0 %v1771_v20  ;;  %v1812_v63 = vld [vmem:[#allocation2 + $0x1f0] sm:$0xff]   ;;  %v1815_v2 = vld [vmem:[#allocation2 + $0x178] sm:$0xff]  }
  0x3b   :  { %1658 = vmatprep.subr.bf16.mxu1 %v1772_v21  ;;  %v1813_v0 = vld [vmem:[#allocation2 + $0x130] sm:$0xff]   ;;  %v1816_v3 = vld [vmem:[#allocation2 + $0x1f8] sm:$0xff]  }
  0x3c   :  { %v1814_v1 = vld [vmem:[#allocation2 + $0x1b0] sm:$0xff]   ;;  %v1817_v4 = vld [vmem:[#allocation2 + $0x138] sm:$0xff]  }
  0x3d   :  { %1637 = vmatpush3.bf16.msra.mxu0 %v1773_v22  ;;  %v1818_v5 = vld [vmem:[#allocation2 + $0x1b8] sm:$0xff]   ;;  %v79_v6 = vld [vmem:[%s2157_s0 + $0x10] sm:$0xff] }
  0x3e   :  { %1659 = vmatpush3.bf16.msra.mxu1 %v1774_v23  ;;  %1638 = vmatprep.subr.bf16.mxu0 %v1775_v24  ;;  %v1482_v7 = vcombine.low %v79_v6, %v79_v6  ;;  %v1483_v8 = vcombine.high %v79_v6, %v79_v6  ;;  %v80_v9 = vld [vmem:[%s2157_s0 + $0x18] sm:$0xff]  ;;  %v1823_v12 = vld [vmem:[#allocation4] ss:$16 sps:$4 sm:$0xff]   ;;  %v1825_v13 = vld [vmem:[#allocation4 + $0x4] ss:$16 sps:$4 sm:$0xff]  }
  0x3f   :  { %1660 = vmatprep.subr.bf16.mxu1 %v1776_v25  ;;  %v1484_v10 = vcombine.low %v80_v9, %v80_v9  ;;  %v1485_v11 = vcombine.high %v80_v9, %v80_v9  ;;  %v1826_v14 = vld [vmem:[#allocation4 + $0x8] ss:$16 sps:$4 sm:$0xff]   ;;  %v1828_v15 = vld [vmem:[#allocation4 + $0xc] ss:$16 sps:$4 sm:$0xff]   ;;  %v1831_v16 = vld [vmem:[#allocation4 + $0x24] ss:$16 sps:$4 sm:$0xff]  }
  0x40   :  { %v1829_v17 = vld [vmem:[#allocation4 + $0x20] ss:$16 sps:$4 sm:$0xff]   ;;  %v1834_v18 = vld [vmem:[#allocation4 + $0x2c] ss:$16 sps:$4 sm:$0xff]   ;;  %v1832_v19 = vld [vmem:[#allocation4 + $0x28] ss:$16 sps:$4 sm:$0xff]  }
  0x41   :  { %1639 = vmatpush3.bf16.msra.mxu0 %v1777_v26  ;;  %v1837_v20 = vld [vmem:[#allocation4 + $0x44] ss:$16 sps:$4 sm:$0xff]   ;;  %v1840_v21 = vld [vmem:[#allocation4 + $0x4c] ss:$16 sps:$4 sm:$0xff]   ;;  %v1835_v22 = vld [vmem:[#allocation4 + $0x40] ss:$16 sps:$4 sm:$0xff]  }
  0x42   :  { %1661 = vmatpush3.bf16.msra.mxu1 %v1778_v27  ;;  %1640 = vmatprep.subr.bf16.mxu0 %v1779_v28  ;;  %v1838_v23 = vld [vmem:[#allocation4 + $0x48] ss:$16 sps:$4 sm:$0xff]   ;;  %v1843_v24 = vld [vmem:[#allocation4 + $0x64] ss:$16 sps:$4 sm:$0xff]   ;;  %v1841_v25 = vld [vmem:[#allocation4 + $0x60] ss:$16 sps:$4 sm:$0xff]  }
  0x43   :  { %1662 = vmatprep.subr.bf16.mxu1 %v1780_v29  ;;  %v1846_v26 = vld [vmem:[#allocation4 + $0x6c] ss:$16 sps:$4 sm:$0xff]   ;;  %v1844_v27 = vld [vmem:[#allocation4 + $0x68] ss:$16 sps:$4 sm:$0xff]   ;;  %v1849_v28 = vld [vmem:[#allocation4 + $0x84] ss:$16 sps:$4 sm:$0xff]  }
  0x44   :  { %v1852_v29 = vld [vmem:[#allocation4 + $0x8c] ss:$16 sps:$4 sm:$0xff]   ;;  %v1855_v32 = vld [vmem:[#allocation4 + $0xa4] ss:$16 sps:$4 sm:$0xff]   ;;  %v1856_v35 = vld [vmem:[#allocation4 + $0xa8] ss:$16 sps:$4 sm:$0xff]  }
  0x45   :  { %1641 = vmatpush3.bf16.msra.mxu0 %v1781_v30  ;;  %v1847_v30 = vld [vmem:[#allocation4 + $0x80] ss:$16 sps:$4 sm:$0xff]   ;;  %v1858_v33 = vld [vmem:[#allocation4 + $0xac] ss:$16 sps:$4 sm:$0xff]  }
  0x46   :  { %1663 = vmatpush3.bf16.msra.mxu1 %v1782_v31  ;;  %1670 = vmatprep.subr.bf16.mxu0 %v1787_v38  ;;  %v1850_v31 = vld [vmem:[#allocation4 + $0x88] ss:$16 sps:$4 sm:$0xff]   ;;  %v1864_v37 = vld [vmem:[#allocation4 + $0xcc] ss:$16 sps:$4 sm:$0xff]   ;;  %v1859_v38 = vld [vmem:[#allocation4 + $0xc0] ss:$16 sps:$4 sm:$0xff]  }
  0x47   :  { %1692 = vmatprep.subr.bf16.mxu1 %v1788_v39  ;;  %v1862_v39 = vld [vmem:[#allocation4 + $0xc8] ss:$16 sps:$4 sm:$0xff]   ;;  %v1907_v6 = vld [vmem:[#allocation4 + $0x1c0] ss:$16 sps:$4 sm:$0xff]   ;;  %v1918_v9 = vld [vmem:[#allocation4 + $0x1ec] ss:$16 sps:$4 sm:$0xff]  }
  0x48   :  { %661 = vmatmul.mubr.bf16.vlgmr.msra.gmra.mrb[0].mxu0 %v1478_v34  ;;  %v1853_v34 = vld [vmem:[#allocation4 + $0xa0] ss:$16 sps:$4 sm:$0xff]  }
  0x49   :  { %701 = vmatmul.mubr.bf16.vlgmr.msra.gmra.mrb[0].mxu1 %v1480_v36  ;;  %1671 = vmatpush3.bf16.msra.mxu0 %v1789_v40  ;;  %v1861_v36 = vld [vmem:[#allocation4 + $0xc4] ss:$16 sps:$4 sm:$0xff]   ;;  %v1865_v40 = vld [vmem:[#allocation4 + $0xe0] ss:$16 sps:$4 sm:$0xff]  }
  0x4a   :  { %1693 = vmatpush3.bf16.msra.mxu1 %v1790_v41  ;;  %1672 = vmatprep.subr.bf16.mxu0 %v1791_v42  ;;  %v1867_v41 = vld [vmem:[#allocation4 + $0xe4] ss:$16 sps:$4 sm:$0xff]   ;;  %v1868_v42 = vld [vmem:[#allocation4 + $0xe8] ss:$16 sps:$4 sm:$0xff]  }
  0x4b   :  { %1694 = vmatprep.subr.bf16.mxu1 %v1792_v43  ;;  %740 = vmatprep.mubr.bf16.mxu0 %v1483_v8  ;;  %v1870_v43 = vld [vmem:[#allocation4 + $0xec] ss:$16 sps:$4 sm:$0xff]   ;;  %v1915_v8 = vld [vmem:[#allocation4 + $0x1e4] ss:$16 sps:$4 sm:$0xff]  }
  0x4c   :  { %780 = vmatprep.mubr.bf16.mxu1 %v1485_v11  ;;  %v1916_v11 = vld [vmem:[#allocation4 + $0x1e8] ss:$16 sps:$4 sm:$0xff]  }
  0x4d   :  { %1673 = vmatpush3.bf16.msra.mxu0 %v1793_v44  ;;  %v1873_v44 = vld [vmem:[#allocation4 + $0x104] ss:$16 sps:$4 sm:$0xff]  }
  0x4e   :  { %1695 = vmatpush3.bf16.msra.mxu1 %v1794_v45  ;;  %1674 = vmatprep.subr.bf16.mxu0 %v1795_v46  ;;  %v1876_v45 = vld [vmem:[#allocation4 + $0x10c] ss:$16 sps:$4 sm:$0xff]   ;;  %v1871_v46 = vld [vmem:[#allocation4 + $0x100] ss:$16 sps:$4 sm:$0xff]  }
  0x4f   :  { %1696 = vmatprep.subr.bf16.mxu1 %v1796_v47  ;;  %v1874_v47 = vld [vmem:[#allocation4 + $0x108] ss:$16 sps:$4 sm:$0xff]  }
  0x51   :  { %1675 = vmatpush3.bf16.msra.mxu0 %v1797_v48  ;;  %v1879_v48 = vld [vmem:[#allocation4 + $0x124] ss:$16 sps:$4 sm:$0xff]  }
  0x52   :  { %1697 = vmatpush3.bf16.msra.mxu1 %v1798_v49  ;;  %1676 = vmatprep.subr.bf16.mxu0 %v1799_v50  ;;  %v1882_v49 = vld [vmem:[#allocation4 + $0x12c] ss:$16 sps:$4 sm:$0xff]   ;;  %v1877_v50 = vld [vmem:[#allocation4 + $0x120] ss:$16 sps:$4 sm:$0xff]  }
  0x53   :  { %1698 = vmatprep.subr.bf16.mxu1 %v1800_v51  ;;  %v1880_v51 = vld [vmem:[#allocation4 + $0x128] ss:$16 sps:$4 sm:$0xff]  }
  0x55   :  { %1677 = vmatpush3.bf16.msra.mxu0 %v1801_v52  ;;  %v1885_v52 = vld [vmem:[#allocation4 + $0x144] ss:$16 sps:$4 sm:$0xff]  }
  0x56   :  { %1699 = vmatpush3.bf16.msra.mxu1 %v1802_v53  ;;  %1678 = vmatprep.subr.bf16.mxu0 %v1803_v54  ;;  %v1888_v53 = vld [vmem:[#allocation4 + $0x14c] ss:$16 sps:$4 sm:$0xff]   ;;  %v1883_v54 = vld [vmem:[#allocation4 + $0x140] ss:$16 sps:$4 sm:$0xff]  }
  0x57   :  { %1700 = vmatprep.subr.bf16.mxu1 %v1804_v55  ;;  %v1886_v55 = vld [vmem:[#allocation4 + $0x148] ss:$16 sps:$4 sm:$0xff]  }
  0x59   :  { %1679 = vmatpush3.bf16.msra.mxu0 %v1805_v56  ;;  %v1891_v56 = vld [vmem:[#allocation4 + $0x164] ss:$16 sps:$4 sm:$0xff]  }
  0x5a   :  { %1701 = vmatpush3.bf16.msra.mxu1 %v1806_v57  ;;  %1680 = vmatprep.subr.bf16.mxu0 %v1807_v58  ;;  %v1894_v57 = vld [vmem:[#allocation4 + $0x16c] ss:$16 sps:$4 sm:$0xff]   ;;  %v1889_v58 = vld [vmem:[#allocation4 + $0x160] ss:$16 sps:$4 sm:$0xff]  }
  0x5b   :  { %1702 = vmatprep.subr.bf16.mxu1 %v1808_v59  ;;  %v1892_v59 = vld [vmem:[#allocation4 + $0x168] ss:$16 sps:$4 sm:$0xff]  }
  0x5d   :  { %1681 = vmatpush3.bf16.msra.mxu0 %v1809_v60  ;;  %v1897_v60 = vld [vmem:[#allocation4 + $0x184] ss:$16 sps:$4 sm:$0xff]  }
  0x5e   :  { %1703 = vmatpush3.bf16.msra.mxu1 %v1810_v61  ;;  %1682 = vmatprep.subr.bf16.mxu0 %v1811_v62  ;;  %v1900_v61 = vld [vmem:[#allocation4 + $0x18c] ss:$16 sps:$4 sm:$0xff]   ;;  %v1895_v62 = vld [vmem:[#allocation4 + $0x180] ss:$16 sps:$4 sm:$0xff]  }
  0x5f   :  { %1704 = vmatprep.subr.bf16.mxu1 %v1812_v63  ;;  %v1898_v63 = vld [vmem:[#allocation4 + $0x188] ss:$16 sps:$4 sm:$0xff]  }
  0x61   :  { %1683 = vmatpush3.bf16.msra.mxu0 %v1813_v0  ;;  %v1903_v0 = vld [vmem:[#allocation4 + $0x1a4] ss:$16 sps:$4 sm:$0xff]  }
  0x62   :  { %1705 = vmatpush3.bf16.msra.mxu1 %v1814_v1  ;;  %1684 = vmatprep.subr.bf16.mxu0 %v1815_v2  ;;  %v1906_v1 = vld [vmem:[#allocation4 + $0x1ac] ss:$16 sps:$4 sm:$0xff]   ;;  %v1901_v2 = vld [vmem:[#allocation4 + $0x1a0] ss:$16 sps:$4 sm:$0xff]  }
  0x63   :  { %1706 = vmatprep.subr.bf16.mxu1 %v1816_v3  ;;  %v1904_v3 = vld [vmem:[#allocation4 + $0x1a8] ss:$16 sps:$4 sm:$0xff]  }
  0x65   :  { %1685 = vmatpush3.bf16.msra.mxu0 %v1817_v4  ;;  %v1909_v4 = vld [vmem:[#allocation4 + $0x1c4] ss:$16 sps:$4 sm:$0xff]  }
  0x66   :  { %1707 = vmatpush3.bf16.msra.mxu1 %v1818_v5  ;;  %1197 = vmatprep.subr.bf16.mxu0 %v1825_v13  ;;  %v1912_v5 = vld [vmem:[#allocation4 + $0x1cc] ss:$16 sps:$4 sm:$0xff]  }
  0x67   :  { %1238 = vmatprep.subr.bf16.mxu1 %v1828_v15 }
  0x68   :  { %741 = vmatmul.mubr.bf16.vlgmr.msra.gmra.mrb[4].mxu0 %v1482_v7  ;;  %v1910_v7 = vld [vmem:[#allocation4 + $0x1c8] ss:$16 sps:$4 sm:$0xff]  }
  0x69   :  { %781 = vmatmul.mubr.bf16.vlgmr.msra.gmra.mrb[4].mxu1 %v1484_v10  ;;  %1198 = vmatpush1.bf16.msra.mxu0 %v1823_v12  ;;  %v1913_v10 = vld [vmem:[#allocation4 + $0x1e0] ss:$16 sps:$4 sm:$0xff]  }
  0x6a   :  { %1239 = vmatpush1.bf16.msra.mxu1 %v1826_v14  ;;  %1199 = vmatprep.subr.bf16.mxu0 %v1831_v16  ;;  %v71_v12 = vld [vmem:[%s2165_s8] sm:$0xff] }
  0x6b   :  { %1240 = vmatprep.subr.bf16.mxu1 %v1834_v18  ;;  %v790_v13 = vpack.c.bf16 %v71_v12, %v71_v12  ;;  %v1477_v16 = vld [vmem:[%s2160_s3] ss:$0 sm:$0xff] }
  0x6d   :  { %1200 = vmatpush1.bf16.msra.mxu0 %v1829_v17  ;;  %1229 = vmatprep.mubr.bf16.mxu0 %v790_v13 }
  0x6e   :  { %1241 = vmatpush1.bf16.msra.mxu1 %v1832_v19  ;;  %1201 = vmatprep.subr.bf16.mxu0 %v1837_v20 }
  0x6f   :  { %1242 = vmatprep.subr.bf16.mxu1 %v1840_v21  ;;  %1270 = vmatprep.mubr.bf16.mxu1 %v790_v13 }
  0x71   :  { %1202 = vmatpush1.bf16.msra.mxu0 %v1835_v22 }
  0x72   :  { %1243 = vmatpush1.bf16.msra.mxu1 %v1838_v23  ;;  %1203 = vmatprep.subr.bf16.mxu0 %v1843_v24 }
  0x73   :  { %1244 = vmatprep.subr.bf16.mxu1 %v1846_v26 }
  0x75   :  { %1204 = vmatpush1.bf16.msra.mxu0 %v1841_v25 }
  0x76   :  { %1245 = vmatpush1.bf16.msra.mxu1 %v1844_v27  ;;  %1205 = vmatprep.subr.bf16.mxu0 %v1849_v28 }
  0x77   :  { %1246 = vmatprep.subr.bf16.mxu1 %v1852_v29 }
  0x79   :  { %1206 = vmatpush1.bf16.msra.mxu0 %v1847_v30 }
  0x7a   :  { %1247 = vmatpush1.bf16.msra.mxu1 %v1850_v31  ;;  %1207 = vmatprep.subr.bf16.mxu0 %v1855_v32 }
  0x7b   :  { %1248 = vmatprep.subr.bf16.mxu1 %v1858_v33 }
  0x7d   :  { %1208 = vmatpush1.bf16.msra.mxu0 %v1853_v34 }
  0x7e   :  { %1249 = vmatpush1.bf16.msra.mxu1 %v1856_v35  ;;  %1209 = vmatprep.subr.bf16.mxu0 %v1861_v36 }
  0x7f   :  { %1250 = vmatprep.subr.bf16.mxu1 %v1864_v37 }
  0x81   :  { %1210 = vmatpush1.bf16.msra.mxu0 %v1859_v38 }
  0x82   :  { %1251 = vmatpush1.bf16.msra.mxu1 %v1862_v39  ;;  %1211 = vmatprep.subr.bf16.mxu0 %v1867_v41  ;;  %v1919_v41 = vld [vmem:[%s2163_s6] sm:$0xff]  }
  0x83   :  { %1252 = vmatprep.subr.bf16.mxu1 %v1870_v43  ;;  %v1920_v43 = vld [vmem:[%s2163_s6 + $0x8] sm:$0xff]  }
  0x85   :  { %1212 = vmatpush1.bf16.msra.mxu0 %v1865_v40 }
  0x86   :  { %1253 = vmatpush1.bf16.msra.mxu1 %v1868_v42  ;;  %1213 = vmatprep.subr.bf16.mxu0 %v1873_v44  ;;  %v2003_v42 = vmov 0.0   ;;  %v1921_v44 = vld [vmem:[%s2163_s6 + $0x10] sm:$0xff]  }
  0x87   :  { %1254 = vmatprep.subr.bf16.mxu1 %v1876_v45  ;;  %v1922_v45 = vld [vmem:[%s2163_s6 + $0x18] sm:$0xff]  }
  0x89   :  { %1214 = vmatpush1.bf16.msra.mxu0 %v1871_v46  ;;  %v1923_v46 = vld [vmem:[%s2163_s6 + $0x20] sm:$0xff]  }
  0x8a   :  { %1255 = vmatpush1.bf16.msra.mxu1 %v1874_v47  ;;  %1215 = vmatprep.subr.bf16.mxu0 %v1879_v48  ;;  %v1924_v47 = vld [vmem:[%s2163_s6 + $0x28] sm:$0xff]   ;;  %v1925_v48 = vld [vmem:[%s2163_s6 + $0x30] sm:$0xff]  }
  0x8b   :  { %1256 = vmatprep.subr.bf16.mxu1 %v1882_v49  ;;  %v1926_v49 = vld [vmem:[%s2163_s6 + $0x38] sm:$0xff]  }
  0x8d   :  { %1216 = vmatpush1.bf16.msra.mxu0 %v1877_v50  ;;  %v857_v50 = vlaneseq }
  0x8e   :  { %1257 = vmatpush1.bf16.msra.mxu1 %v1880_v51  ;;  %1217 = vmatprep.subr.bf16.mxu0 %v1885_v52 }
  0x8f   :  { %1258 = vmatprep.subr.bf16.mxu1 %v1888_v53  ;;  %v858_v51 = vshrl.u32 %v857_v50, 7  ;;  %v855_v53 = vld [vmem:[%s2162_s5] sm:$0xf] }
  0x91   :  { %1218 = vmatpush1.bf16.msra.mxu0 %v1883_v54  ;;  %v859_v52 = vsub.s32 0, %v858_v51  ;;  %v863_v54 = vsub.s32 1, %v858_v51 }
  0x92   :  { %1259 = vmatpush1.bf16.msra.mxu1 %v1886_v55  ;;  %1219 = vmatprep.subr.bf16.mxu0 %v1891_v56 }
  0x93   :  { %1260 = vmatprep.subr.bf16.mxu1 %v1894_v57  ;;  %v860_v55 = vrot.slane %v855_v53, %v859_v52  ;;  %v864_v56 = vrot.slane %v855_v53, %v863_v54 }
  0x95   :  { %1220 = vmatpush1.bf16.msra.mxu0 %v1889_v58 }
  0x96   :  { %1261 = vmatpush1.bf16.msra.mxu1 %v1892_v59  ;;  %1221 = vmatprep.subr.bf16.mxu0 %v1897_v60  ;;  %v871_v59 = vsub.s32 3, %v858_v51 }
  0x97   :  { %1262 = vmatprep.subr.bf16.mxu1 %v1900_v61 }
  0x99   :  { %1222 = vmatpush1.bf16.msra.mxu0 %v1895_v62 }
  0x9a   :  { %1263 = vmatpush1.bf16.msra.mxu1 %v1898_v63  ;;  %1223 = vmatprep.subr.bf16.mxu0 %v1903_v0 }
  0x9b   :  { %1264 = vmatprep.subr.bf16.mxu1 %v1906_v1 }
  0x9d   :  { %1224 = vmatpush1.bf16.msra.mxu0 %v1901_v2 }
  0x9e   :  { %1265 = vmatpush1.bf16.msra.mxu1 %v1904_v3  ;;  %1225 = vmatprep.subr.bf16.mxu0 %v1909_v4 }
  0x9f   :  { %1266 = vmatprep.subr.bf16.mxu1 %v1912_v5 }
  0xa1   :  { %1226 = vmatpush1.bf16.msra.mxu0 %v1907_v6  ;;  %v872_v6 = vrot.slane %v855_v53, %v871_v59 }
  0xa2   :  { %1267 = vmatpush1.bf16.msra.mxu1 %v1910_v7  ;;  %1227 = vmatprep.subr.bf16.mxu0 %v1915_v8  ;;  %v867_v7 = vsub.s32 2, %v858_v51 }
  0xa3   :  { %1268 = vmatprep.subr.bf16.mxu1 %v1918_v9 }
  0xa4   :  { %v868_v9 = vrot.slane %v855_v53, %v867_v7 }
  0xa5   :  { %1228 = vmatpush1.bf16.msra.mxu0 %v1913_v10 }
  0xa6   :  { %1269 = vmatpush1.bf16.msra.mxu1 %v1916_v11  ;;  %1723 = vmatprep.subr.bf16.mxu0 %v2003_v42 }
 0x11b   :  { %v1642_v14 = vpop.f32.mrb[0].mxu0 }
 0x11c   :  { %v1664_v15 = vpop.f32.mrb[0].mxu1  ;;  %v1643_v17 = vpop.f32.mrb[1].mxu0 }
 0x11d   :  { %v1665_v18 = vpop.f32.mrb[1].mxu1  ;;  %v1644_v19 = vadd.f32 %v1643_v17, %v1642_v14  ;;  %v1645_v21 = vpop.f32.mrb[2].mxu0 }
 0x11e   :  { %v1666_v20 = vadd.f32 %v1665_v18, %v1664_v15  ;;  %v1667_v22 = vpop.f32.mrb[2].mxu1  ;;  %v1646_v23 = vpop.f32.mrb[3].mxu0  ;;  %v73_v18 = vld [vmem:[%s2166_s9] sm:$0xff] }
 0x11f   :  { %v1668_v24 = vpop.f32.mrb[3].mxu1  ;;  %v663_v25 = vadd.f32 %v1644_v19, %v1477_v16 }
 0x121   :  { %v703_v26 = vadd.f32 %v1666_v20, %v663_v25 }
 0x13b   :  { %v1686_v27 = vpop.f32.mrb[4].mxu0 }
 0x13c   :  { %v1708_v28 = vpop.f32.mrb[4].mxu1  ;;  %v1687_v29 = vpop.f32.mrb[5].mxu0 }
 0x13d   :  { %v1709_v30 = vpop.f32.mrb[5].mxu1  ;;  %v1688_v31 = vadd.f32 %v1687_v29, %v1686_v27  ;;  %v1689_v33 = vpop.f32.mrb[6].mxu0  ;;  %v1418_v29 = vand.u32 127, %v857_v50 }
 0x13e   :  { %v1710_v32 = vadd.f32 %v1709_v30, %v1708_v28  ;;  %v1711_v34 = vpop.f32.mrb[6].mxu1  ;;  %v1690_v35 = vpop.f32.mrb[7].mxu0  ;;  %v1617_v30 = vld [vmem:[%s2164_s7] ss:$0 sm:$0xff] }
 0x13f   :  { %v1712_v36 = vpop.f32.mrb[7].mxu1  ;;  %v743_v37 = vadd.f32 %v1688_v31, %v703_v26  ;;  %vm1423_vm1 = vcmp.lt.s32.totalorder %v1418_v29, 8  ;;  %v1438_v34 = vld [vmem:[%s2158_s1] sm:$0xff]  ;;  %vm1419_vm3 = vcmp.eq.s32.totalorder %v1418_v29, 8  ;;  %vm1450_vm4 = vcmp.eq.s32.totalorder %v1418_v29, 0 }
 0x140   :  { %vm1452_vm5 = vcmp.eq.s32.totalorder %v1418_v29, 1  ;;  %vm1455_vm6 = vcmp.eq.s32.totalorder %v1418_v29, 2  ;;  %vm1458_vm7 = vcmp.eq.s32.totalorder %v1418_v29, 3 }
 0x141   :  { %v783_v38 = vadd.f32 %v1710_v32, %v743_v37 }
 0x143   :  { %v788_v39 = vmax.f32 %v783_v38, 0.0 }
 0x145   :  { %v789_v40 = vpack.c.bf16 %v788_v39, %v788_v39 }
 0x147   :  { %1230 = vmatmul.mubr.bf16.vlgmr.msra.gmra.mrb[8].mxu0 %v789_v40  ;;  %1271 = vmatmul.mubr.bf16.vlgmr.msra.gmra.mrb[8].mxu1 %v789_v40 }
 0x148   :  { %1724 = vmatpush3.bf16.msra.mxu0 %v1919_v41  ;;  %1739 = vmatprep.mubr.msk.bf16.mxu0 %vm2004_vm0, %v2003_v42 }
 0x149   :  { %1725 = vmatprep.subr.bf16.mxu0 %v2003_v42 }
 0x14c   :  { %1726 = vmatpush3.bf16.msra.mxu0 %v1920_v43 }
 0x14d   :  { %1727 = vmatprep.subr.bf16.mxu0 %v2003_v42 }
 0x150   :  { %1728 = vmatpush3.bf16.msra.mxu0 %v1921_v44 }
 0x151   :  { %1729 = vmatprep.subr.bf16.mxu0 %v2003_v42 }
 0x154   :  { %1730 = vmatpush3.bf16.msra.mxu0 %v1922_v45 }
 0x155   :  { %1731 = vmatprep.subr.bf16.mxu0 %v2003_v42 }
 0x158   :  { %1732 = vmatpush3.bf16.msra.mxu0 %v1923_v46 }
 0x159   :  { %1733 = vmatprep.subr.bf16.mxu0 %v2003_v42 }
 0x15c   :  { %1734 = vmatpush3.bf16.msra.mxu0 %v1924_v47 }
 0x15d   :  { %1735 = vmatprep.subr.bf16.mxu0 %v2003_v42 }
 0x160   :  { %1736 = vmatpush3.bf16.msra.mxu0 %v1925_v48 }
 0x161   :  { %1737 = vmatprep.subr.bf16.mxu0 %v2003_v42 }
 0x164   :  { %1738 = vmatpush3.bf16.msra.mxu0 %v1926_v49 }
 0x21a   :  { %v1231_v57 = vpop.f32.mrb[8].mxu0  ;;  %v1272_v58 = vpop.f32.mrb[8].mxu1 }
 0x21b   :  { %v1232_v60 = vadd.f32 %v1231_v57, %v860_v55  ;;  %v1233_v61 = vpop.f32.mrb[9].mxu0  ;;  %v1274_v62 = vpop.f32.mrb[9].mxu1  ;;  %v1273_v11 = vadd.f32 %v1272_v58, %v868_v9 }
 0x21c   :  { %v1234_v63 = vadd.f32 %v1233_v61, %v864_v56  ;;  %v1235_v0 = vpop.f32.mrb[10].mxu0  ;;  %v1276_v1 = vpop.f32.mrb[10].mxu1  ;;  %v1275_v8 = vadd.f32 %v1274_v62, %v872_v6 }
 0x21d   :  { %v1614_v2 = vmul.f32 -1.442695, %v1232_v60  ;;  %v1236_v3 = vpop.f32.mrb[11].mxu0  ;;  %v1277_v4 = vpop.f32.mrb[11].mxu1 }
 0x21e   :  { %v1615_v5 = vmul.f32 -1.442695, %v1234_v63  ;;  %v1616_v10 = vmul.f32 -1.442695, %v1275_v8 }
 0x21f   :  { %1927 = vpow2.f32 %v1614_v2 }
 0x220   :  { %1929 = vpow2.f32 %v1615_v5 }
 0x221   :  { %1931 = vpow2.f32 %v1616_v10 }
 0x222   :  { %1933 = vtanh.f32 %v1273_v11 }
 0x229   :  { %v1928_v12 = vpop.eup %1927 }
 0x22a   :  { %v1930_v13 = vpop.eup %1929  ;;  %v1282_v14 = vadd.f32 1.0, %v1928_v12 }
 0x22b   :  { %v1288_v15 = vadd.f32 1.0, %v1930_v13  ;;  %v1932_v16 = vpop.eup %1931 }
 0x22c   :  { %1935 = vrcp.f32 %v1282_v14  ;;  %v1934_v17 = vpop.eup %1933  ;;  %v1295_v22 = vadd.f32 1.0, %v1932_v16 }
 0x22d   :  { %1937 = vrcp.f32 %v1288_v15 }
 0x22e   :  { %1939 = vrcp.f32 %v1295_v22 }
 0x236   :  { %v1936_v19 = vpop.eup %1935 }
 0x237   :  { %v1938_v20 = vpop.eup %1937  ;;  %v1299_v21 = vmul.f32 %v1936_v19, %v1934_v17 }
 0x238   :  { %v1298_v23 = vmul.f32 %v1938_v20, %v73_v18  ;;  %v1940_v25 = vpop.eup %1939 }
 0x23a   :  { %v1300_v24 = vadd.f32 %v1299_v21, %v1298_v23 }
 0x23c   :  { %1941 = vtanh.f32 %v1300_v24  ;;  %1304 = vst [vmem:[%s2169_s12] sm:$0xff] %v1300_v24 }
 0x246   :  { %v1942_v26 = vpop.eup %1941 }
 0x247   :  { %v1302_v27 = vmul.f32 %v1942_v26, %v1940_v25 }
 0x249   :  { %1303 = vst [vmem:[%s2168_s11] sm:$0xff] %v1302_v27  ;;  %v1305_v28 = vpack.c.bf16 %v1302_v27, %v1302_v27 }
 0x24b   :  { %1740 = vmatmul.mubr.bf16.vlgmr.msra.gmra.mrb[12].mxu0 %v1305_v28 }
 0x31e   :  { %v1411_v31 = vpop.f32.mrb[12].mxu0 }
 0x31f   :  { %v1412_v32 = vadd.f32 %v1617_v30, %v1411_v31  ;;  %v1741_v33 = vpop.f32.mrb[13].mxu0 }
 0x320   :  { %v1414_v35 = vpop.f32.mrb[14].mxu0 }
 0x321   :  { %v1742_v36 = vpop.f32.mrb[15].mxu0  ;;  %v1424_v37 = vsel %vm1423_vm1, %v1412_v32, -1e+30  ;;  %v1420_v52 = vsel %vm1419_vm3, %v1412_v32, 0.0 }
 0x322   :  { %1425 = vmax.xlane.f32.xlu0 %v1424_v37  ;;  %v1439_v38 = vadd.f32 %v1438_v34, %v1424_v37 }
 0x324   :  { %1440 = vmax.index.xlane.f32.xlu1 %v1439_v38 }
 0x3af   :  { %v1426_v39 = vpop.xlane.xlu0 %1425 }
 0x3b0   :  { %v1427_v40 = vsub.f32 %v1424_v37, %v1426_v39 }
 0x3b1   :  { %v1441_v46 = vpop.xlane.xlu1 %1440 }
 0x3b2   :  { %v1428_v41 = vmul.f32 1.442695, %v1427_v40  ;;  %vm1442_vm2 = vcmp.eq.s32.totalorder %v1418_v29, %v1441_v46  ;;  %v1459_v56 = vcvt.s32.f32 %v1441_v46 }
 0x3b4   :  { %1943 = vpow2.f32 %v1428_v41  ;;  %v1460_v63 = vsel %vm1458_vm7, %v1459_v56, 0.0 }
 0x3be   :  { %v1944_v42 = vpop.eup %1943 }
 0x3bf   :  { %1430 = vadd.xlane.f32.xlu0 %v1944_v42 }
 0x44c   :  { %v1431_v43 = vpop.xlane.xlu0 %1430 }
 0x44d   :  { %1945 = vrcp.f32 %v1431_v43 }
 0x44e   :  { %1947 = vlog2.f32 %v1431_v43 }
 0x457   :  { %v1946_v44 = vpop.eup %1945 }
 0x458   :  { %v1948_v45 = vpop.eup %1947  ;;  %v1434_v49 = vmul.f32 %v1946_v44, %v1944_v42 }
 0x459   :  { %v1436_v47 = vmul.f32 0.6931472, %v1948_v45 }
 0x45b   :  { %v1437_v48 = vsub.f32 %v1427_v40, %v1436_v47 }
 0x45d   :  { %v1443_v50 = vsel %vm1442_vm2, %v1437_v48, 0.0  ;;  %v1446_v51 = vmul.f32 %v1437_v48, %v1434_v49 }
 0x45e   :  { %1444 = vadd.xlane.f32.xlu0 %v1443_v50 }
 0x45f   :  { %1447 = vadd.xlane.f32.xlu1 %v1446_v51 }
 0x463   :  { %1421 = vadd.xlane.f32.xlu1 %v1420_v52 }
 0x4eb   :  { %v1445_v53 = vpop.xlane.xlu0 %1444 }
 0x4ec   :  { %v1448_v54 = vpop.xlane.xlu1 %1447  ;;  %v1451_v57 = vsel %vm1450_vm4, %v1445_v53, 0.0 }
 0x4ed   :  { %v1449_v55 = vsub.f32 0.0, %v1448_v54 }
 0x4ef   :  { %v1453_v58 = vsel %vm1452_vm5, %v1449_v55, 0.0 }
 0x4f0   :  { %v1454_v59 = vadd.f32 %v1453_v58, %v1451_v57  ;;  %v1422_v60 = vpop.xlane.xlu1 %1421 }
 0x4f1   :  { %v1456_v61 = vsel %vm1455_vm6, %v1422_v60, 0.0 }
 0x4f2   :  { %v1457_v62 = vadd.f32 %v1456_v61, %v1454_v59 }
 0x4f4   :  { %v1461_v0 = vadd.f32 %v1460_v63, %v1457_v62 }
 0x4f6   :  { %1462 = vst [vmem:[%s2167_s10] sm:$0xff] %v1461_v0 }
 0x4f7   :  { %1475 = vsyncpa [#allocation3], 1 }
 0x4f8   :  { %1476 = vsyncpa [#allocation5], 1 }

</bundles_post_ra>
